<compile_context>
chip_gen: v7x
topology: tpu7x:2x2x1
jax: 0.10.0
libtpu: 0.0.40
codegen_flags: <defaults>
</compile_context>

<pallas_src>
import functools

import jax
import jax.numpy as jnp
from jax.experimental import pallas as pl
from jax.experimental.pallas import tpu as pltpu


def _round_up(a, b):
    return ((a + b - 1) // b) * b


def _cdiv(a, b):
    return (a + b - 1) // b


def _physical_vmem_bytes():
    """Best-effort query of per-TensorCore VMEM capacity; conservative fallback."""
    try:
        info = pltpu.get_tpu_info()
        for attr in ("vmem_capacity_bytes", "vmem_size_bytes", "vmem_bytes"):
            v = getattr(info, attr, None)
            if v:
                return int(v)
    except Exception:
        pass
    try:
        kind = jax.devices()[0].device_kind.lower()
    except Exception:
        kind = ""
    if "v7" in kind or "7x" in kind:
        return 64 * 1024 * 1024
    if any(t in kind for t in ("v2", "v3", "v4", "v5", "v6")):
        return 128 * 1024 * 1024
    return 64 * 1024 * 1024  # unknown -> assume the smallest (v7x)


def _vmem_budget_bytes():
    phys = _physical_vmem_bytes()
    if phys <= 64 * 1024 * 1024:
        return 52 * 1024 * 1024       # v7x: 64 MiB physical, leave ~12 MiB headroom
    return 104 * 1024 * 1024          # v5e / v6e: 128 MiB physical


def _ff_kernel(x_ref, gamma_ref, beta_ref, w1_ref, b1_ref, w2_ref, b2_ref,
               o_ref, *scratch, dim_true, single_step, acc_into_out,
               approximate_gelu):
    w_dtype = w1_ref.dtype

    def layernorm():
        x = x_ref[...].astype(jnp.float32)
        inv_d = jnp.float32(1.0 / dim_true)
        mean = jnp.sum(x, axis=-1, keepdims=True) * inv_d
        diff = x - mean
        if dim_true != x.shape[-1]:
            # padded lanes (zeros) must not contribute to the variance
            lane = jax.lax.broadcasted_iota(jnp.int32, x.shape, 1)
            diff = jnp.where(lane < dim_true, diff, 0.0)
        var = jnp.sum(diff * diff, axis=-1, keepdims=True) * inv_d
        xn = diff * jax.lax.rsqrt(var + jnp.float32(1e-5))
        return xn * gamma_ref[...] + beta_ref[...]

    def gelu(h):
        if approximate_gelu:
            return jax.nn.gelu(h, approximate=True)          # tanh -> EUP slot
        # exact erf GELU (matches torch.nn.GELU default)
        return 0.5 * h * (1.0 + jax.lax.erf(h * jnp.float32(0.7071067811865476)))

    if single_step:
        # Weights fully VMEM-resident: one fused pass per row tile, no scratch.
        xn = layernorm().astype(w_dtype)
        h = jnp.dot(xn, w1_ref[...], preferred_element_type=jnp.float32)
        h = gelu(h + b1_ref[...])
        y = jnp.dot(h.astype(w_dtype), w2_ref[...], preferred_element_type=jnp.float32)
        o_ref[...] = (y + b2_ref[...]).astype(o_ref.dtype)
        return

    # Hidden dimension tiled: grid = (row_tiles, hidden_tiles); hidden is the reduction.
    k = pl.program_id(1)
    n_k = pl.num_programs(1)
    xn_ref = scratch[0]
    acc_ref = o_ref if acc_into_out else scratch[1]

    @pl.when(k == 0)
    def _():
        xn_ref[...] = layernorm().astype(xn_ref.dtype)   # cache LN output once per row tile
        acc_ref[...] = jnp.broadcast_to(b2_ref[...], acc_ref.shape).astype(acc_ref.dtype)

    h = jnp.dot(xn_ref[...], w1_ref[...], preferred_element_type=jnp.float32)
    h = gelu(h + b1_ref[...])
    acc_ref[...] += jnp.dot(h.astype(w_dtype), w2_ref[...],
                            preferred_element_type=jnp.float32)

    if not acc_into_out:
        @pl.when(k == n_k - 1)
        def _():
            o_ref[...] = acc_ref[...].astype(o_ref.dtype)


def prepare_feed_forward_params(gamma, beta, w1, b1, w2, b2, *,
                                compute_dtype=None, vmem_budget_bytes=None):
    """One-time parameter prep: cast/pad the weights and fix the hidden-dim tiling.

    Hoisted out of the per-call path so weight cast/pad HBM traffic is paid once.
    Weights are (in, out): y = x @ W + b.
    """
    dim, hidden = w1.shape
    if compute_dtype is None:
        compute_dtype = w1.dtype
    compute_dtype = jnp.dtype(compute_dtype)
    if vmem_budget_bytes is None:
        vmem_budget_bytes = _vmem_budget_bytes()
    w_bytes = compute_dtype.itemsize

    dim_pad = dim if dim % 128 == 0 else _round_up(dim, 128)
    hid128 = _round_up(hidden, 128)

    # Keep W1 + W2 fully resident (single hidden step) when their double-buffered
    # blocks fit in ~45% of the budget; otherwise derive tk from the budget,
    # accounting for dim_pad (4 = two weights x two pipeline buffers).
    if 4 * dim_pad * hid128 * w_bytes <= 0.45 * vmem_budget_bytes:
        tk = hid128
    else:
        tk = int(0.40 * vmem_budget_bytes) // (4 * dim_pad * w_bytes)
        tk = max(128, (tk // 128) * 128)
        tk = min(tk, hid128)
    hidden_pad = _round_up(hidden, tk)

    def pad2(a, r, c, dtype):
        a = a.astype(dtype)
        return jnp.pad(a, ((0, r - a.shape[0]), (0, c - a.shape[1])))

    return dict(
        gamma=pad2(gamma.reshape(1, dim), 1, dim_pad, jnp.float32),
        beta=pad2(beta.reshape(1, dim), 1, dim_pad, jnp.float32),
        w1=pad2(w1, dim_pad, hidden_pad, compute_dtype),
        b1=pad2(b1.reshape(1, hidden), 1, hidden_pad, jnp.float32),
        w2=pad2(w2, hidden_pad, dim_pad, compute_dtype),
        b2=pad2(b2.reshape(1, dim), 1, dim_pad, jnp.float32),
        dim=dim, hidden=hidden, dim_pad=dim_pad, hidden_pad=hidden_pad,
        tk=tk, compute_dtype=compute_dtype, vmem_budget_bytes=vmem_budget_bytes,
    )


def feed_forward(x, params, *, tm=None, approximate_gelu=False):
    """x: (..., dim) -> (..., dim) using pre-prepared params."""
    dim = params["dim"]
    dim_pad = params["dim_pad"]
    hidden_pad = params["hidden_pad"]
    tk = params["tk"]
    compute_dtype = params["compute_dtype"]
    budget = params["vmem_budget_bytes"]

    orig_shape = x.shape
    assert x.shape[-1] == dim
    M = 1
    for s in x.shape[:-1]:
        M *= s
    x2d = x.reshape(M, dim)

    # bf16 compute path: ship activations as bf16 (halves x DMA + VMEM);
    # LayerNorm statistics are still computed in f32 inside the kernel.
    if compute_dtype == jnp.dtype(jnp.bfloat16) and x2d.dtype != jnp.bfloat16:
        x2d = x2d.astype(jnp.bfloat16)
    if dim_pad != dim:
        x2d = jnp.pad(x2d, ((0, 0), (0, dim_pad - dim)))

    out_dtype = x.dtype
    x_bytes = jnp.dtype(x2d.dtype).itemsize
    out_bytes = jnp.dtype(out_dtype).itemsize
    w_bytes = compute_dtype.itemsize

    n_k = hidden_pad // tk
    single_step = n_k == 1
    acc_into_out = (not single_step) and (out_dtype == jnp.float32)

    # ---- row tile: as large as the remaining VMEM budget allows ----
    if tm is None:
        fixed = 4 * dim_pad * tk * w_bytes               # W1 + W2 (double-buffered)
        fixed += 4 * (tk + 3 * dim_pad) * 4              # biases / gamma / beta
        per_row = 2 * dim_pad * x_bytes                  # x block (double-buffered)
        per_row += 2 * dim_pad * out_bytes               # output block
        per_row += 2 * tk * 4                            # GELU intermediate (f32) + slack
        per_row += 2 * dim_pad * 4                       # LN / cast temporaries
        if not single_step:
            per_row += dim_pad * w_bytes                 # cached LayerNorm output
            if not acc_into_out:
                per_row += dim_pad * 4                   # f32 accumulator scratch
        tm = int((0.85 * budget - fixed) // per_row)
        tm = max(8, min(1024, (tm // 8) * 8))
    tm = max(8, (min(tm, _round_up(M, 8)) // 8) * 8)
    # Give both TensorCores (v7x megacore) work: prefer >= 2 row tiles.
    if M > 8 and _cdiv(M, tm) < 2:
        tm = max(8, _round_up(_cdiv(M, 2), 8))

    grid_rows = _cdiv(M, tm)   # no M padding: ragged tail tile handled by Pallas masking

    kernel = functools.partial(
        _ff_kernel, dim_true=dim, single_step=single_step,
        acc_into_out=acc_into_out, approximate_gelu=approximate_gelu)

    if single_step:
        grid = (grid_rows,)
        in_specs = [
            pl.BlockSpec((tm, dim_pad), lambda i: (i, 0)),           # x rows
            pl.BlockSpec((1, dim_pad), lambda i: (0, 0)),            # gamma
            pl.BlockSpec((1, dim_pad), lambda i: (0, 0)),            # beta
            pl.BlockSpec((dim_pad, hidden_pad), lambda i: (0, 0)),   # W1 (VMEM-resident)
            pl.BlockSpec((1, hidden_pad), lambda i: (0, 0)),         # b1
            pl.BlockSpec((hidden_pad, dim_pad), lambda i: (0, 0)),   # W2 (VMEM-resident)
            pl.BlockSpec((1, dim_pad), lambda i: (0, 0)),            # b2
        ]
        out_specs = pl.BlockSpec((tm, dim_pad), lambda i: (i, 0))
        scratch_shapes = []
        dim_sem = ("parallel",)
    else:
        # If profiling shows exposed weight DMA on v5e/v6e, pipeline_mode=pl.Buffered(3)
        # on the W1/W2 specs is the next lever (not on v7x: VMEM too small).
        grid = (grid_rows, n_k)
        in_specs = [
            pl.BlockSpec((tm, dim_pad), lambda i, k: (i, 0)),        # x rows
            pl.BlockSpec((1, dim_pad), lambda i, k: (0, 0)),         # gamma
            pl.BlockSpec((1, dim_pad), lambda i, k: (0, 0)),         # beta
            pl.BlockSpec((dim_pad, tk), lambda i, k: (0, k)),        # W1[:, k-chunk]
            pl.BlockSpec((1, tk), lambda i, k: (0, k)),              # b1[k-chunk]
            pl.BlockSpec((tk, dim_pad), lambda i, k: (k, 0)),        # W2[k-chunk, :]
            pl.BlockSpec((1, dim_pad), lambda i, k: (0, 0)),         # b2
        ]
        out_specs = pl.BlockSpec((tm, dim_pad), lambda i, k: (i, 0))
        scratch_shapes = [pltpu.VMEM((tm, dim_pad), compute_dtype)]  # cached LN output
        if not acc_into_out:
            scratch_shapes.append(pltpu.VMEM((tm, dim_pad), jnp.float32))
        dim_sem = ("parallel", "arbitrary")

    out2d = pl.pallas_call(
        kernel,
        out_shape=jax.ShapeDtypeStruct((M, dim_pad), out_dtype),
        grid_spec=pltpu.PrefetchScalarGridSpec(
            num_scalar_prefetch=0,
            grid=grid,
            in_specs=in_specs,
            out_specs=out_specs,
            scratch_shapes=scratch_shapes,
        ),
        compiler_params=pltpu.CompilerParams(
            dimension_semantics=dim_sem,
            vmem_limit_bytes=int(budget),
        ),
    )(x2d, params["gamma"], params["beta"], params["w1"], params["b1"],
      params["w2"], params["b2"])

    if dim_pad != dim:
        out2d = out2d[:, :dim]
    return out2d.reshape(orig_shape)


def _reference(x, gamma, beta, w1, b1, w2, b2, compute_dtype=jnp.float32):
    xf = x.astype(compute_dtype).astype(jnp.float32)
    mean = jnp.mean(xf, axis=-1, keepdims=True)
    var = jnp.mean(jnp.square(xf - mean), axis=-1, keepdims=True)
    xn = (xf - mean) * jax.lax.rsqrt(var + 1e-5) * gamma + beta
    xn = xn.astype(compute_dtype)
    h = jnp.dot(xn, w1.astype(compute_dtype), preferred_element_type=jnp.float32) + b1
    h = jax.nn.gelu(h, approximate=False)
    y = jnp.dot(h.astype(compute_dtype), w2.astype(compute_dtype),
                preferred_element_type=jnp.float32) + b2
    return y.astype(x.dtype)


if __name__ == "__main__":
    batch, seq, dim, hidden = 2, 8, 32, 64

    key = jax.random.PRNGKey(0)
    kx, kg, kb, kw1, kb1, kw2, kb2 = jax.random.split(key, 7)

    x = jax.random.normal(kx, (batch, seq, dim), dtype=jnp.float32)
    gamma = 1.0 + 0.1 * jax.random.normal(kg, (dim,), dtype=jnp.float32)
    beta = 0.1 * jax.random.normal(kb, (dim,), dtype=jnp.float32)
    w1 = jax.random.normal(kw1, (dim, hidden), dtype=jnp.float32) / jnp.sqrt(dim)
    b1 = 0.1 * jax.random.normal(kb1, (hidden,), dtype=jnp.float32)
    w2 = jax.random.normal(kw2, (hidden, dim), dtype=jnp.float32) / jnp.sqrt(hidden)
    b2 = 0.1 * jax.random.normal(kb2, (dim,), dtype=jnp.float32)

    # --- f32 path (torch-parity numerics) ---
    params_f32 = prepare_feed_forward_params(gamma, beta, w1, b1, w2, b2)
    out = jax.block_until_ready(feed_forward(x, params_f32))
    ref = _reference(x, gamma, beta, w1, b1, w2, b2)
    assert out.shape == (batch, seq, dim)
    assert jnp.allclose(out, ref, atol=2e-4, rtol=2e-4), "f32 path mismatch vs reference"

    # --- bf16 fast path (bf16 weights + bf16 activation DMA, f32 accumulation) ---
    params_bf16 = prepare_feed_forward_params(
        gamma, beta, w1.astype(jnp.bfloat16), b1, w2.astype(jnp.bfloat16), b2)
    out_bf16 = jax.block_until_ready(feed_forward(x, params_bf16))
    ref_bf16 = _reference(x, gamma, beta, w1, b1, w2, b2, compute_dtype=jnp.bfloat16)
    assert jnp.allclose(out_bf16, ref_bf16, atol=5e-2, rtol=5e-2), \
        "bf16 path mismatch vs bf16 reference"

    print("KERNEL_OK")
</pallas_src>

<mosaic_0001>
module attributes {stable_mosaic.version = 11 : i64} {
  func.func @_ff_kernel(%arg0: i32, %arg1: memref<8x128xf32, #tpu.memory_space<vmem>>, %arg2: memref<1x128xf32, #tpu.memory_space<vmem>>, %arg3: memref<1x128xf32, #tpu.memory_space<vmem>>, %arg4: memref<128x128xf32, #tpu.memory_space<vmem>>, %arg5: memref<1x128xf32, #tpu.memory_space<vmem>>, %arg6: memref<128x128xf32, #tpu.memory_space<vmem>>, %arg7: memref<1x128xf32, #tpu.memory_space<vmem>>, %arg8: memref<8x128xf32, #tpu.memory_space<vmem>>) attributes {dimension_semantics = [#tpu.dimension_semantics<parallel>], iteration_bounds = array<i64: 2>, scalar_prefetch = 0 : i64, scratch_operands = 0 : i64, tpu.core_type = #tpu.core_type<tc>, window_params = [{transform_indices = @transform_0, window_bounds = array<i64: 8, 128>}, {pipeline_mode = #tpu.pipeline_mode<synchronous>, transform_indices = @transform_1, window_bounds = array<i64: 1, 128>}, {pipeline_mode = #tpu.pipeline_mode<synchronous>, transform_indices = @transform_2, window_bounds = array<i64: 1, 128>}, {pipeline_mode = #tpu.pipeline_mode<synchronous>, transform_indices = @transform_3, window_bounds = array<i64: 128, 128>}, {pipeline_mode = #tpu.pipeline_mode<synchronous>, transform_indices = @transform_4, window_bounds = array<i64: 1, 128>}, {pipeline_mode = #tpu.pipeline_mode<synchronous>, transform_indices = @transform_5, window_bounds = array<i64: 128, 128>}, {pipeline_mode = #tpu.pipeline_mode<synchronous>, transform_indices = @transform_6, window_bounds = array<i64: 1, 128>}, {transform_indices = @transform_7, window_bounds = array<i64: 8, 128>}]} {
    %c0 = arith.constant 0 : index
    %c0_0 = arith.constant 0 : index
    %0 = vector.load %arg1[%c0, %c0_0] : memref<8x128xf32, #tpu.memory_space<vmem>>, vector<8x128xf32>
    %cst = arith.constant dense<0.000000e+00> : vector<8xf32>
    %1 = vector.multi_reduction <add>, %0, %cst [1] : vector<8x128xf32> to vector<8xf32>
    %2 = vector.shape_cast %1 : vector<8xf32> to vector<8x1xf32>
    %cst_1 = arith.constant 3.125000e-02 : f32
    %3 = vector.broadcast %cst_1 : f32 to vector<8x1xf32>
    %4 = arith.mulf %2, %3 : vector<8x1xf32>
    %5 = vector.broadcast %4 : vector<8x1xf32> to vector<8x128xf32>
    %6 = arith.subf %0, %5 : vector<8x128xf32>
    %7 = tpu.iota {dimensions = array<i32: 1>} : vector<8x128xi32>
    %c32_i32 = arith.constant 32 : i32
    %8 = vector.broadcast %c32_i32 : i32 to vector<8x128xi32>
    %9 = arith.cmpi slt, %7, %8 : vector<8x128xi32>
    %cst_2 = arith.constant 0.000000e+00 : f32
    %10 = vector.broadcast %cst_2 : f32 to vector<8x128xf32>
    %11 = arith.select %9, %6, %10 : vector<8x128xi1>, vector<8x128xf32>
    %12 = arith.mulf %11, %11 : vector<8x128xf32>
    %cst_3 = arith.constant dense<0.000000e+00> : vector<8xf32>
    %13 = vector.multi_reduction <add>, %12, %cst_3 [1] : vector<8x128xf32> to vector<8xf32>
    %14 = vector.shape_cast %13 : vector<8xf32> to vector<8x1xf32>
    %cst_4 = arith.constant 3.125000e-02 : f32
    %15 = vector.broadcast %cst_4 : f32 to vector<8x1xf32>
    %16 = arith.mulf %14, %15 : vector<8x1xf32>
    %cst_5 = arith.constant 9.99999974E-6 : f32
    %17 = vector.broadcast %cst_5 : f32 to vector<8x1xf32>
    %18 = arith.addf %16, %17 : vector<8x1xf32>
    %19 = math.rsqrt %18 : vector<8x1xf32>
    %20 = vector.broadcast %19 : vector<8x1xf32> to vector<8x128xf32>
    %21 = arith.mulf %11, %20 : vector<8x128xf32>
    %c0_6 = arith.constant 0 : index
    %c0_7 = arith.constant 0 : index
    %22 = vector.load %arg2[%c0_6, %c0_7] : memref<1x128xf32, #tpu.memory_space<vmem>>, vector<1x128xf32>
    %23 = vector.broadcast %22 : vector<1x128xf32> to vector<8x128xf32>
    %24 = arith.mulf %21, %23 : vector<8x128xf32>
    %c0_8 = arith.constant 0 : index
    %c0_9 = arith.constant 0 : index
    %25 = vector.load %arg3[%c0_8, %c0_9] : memref<1x128xf32, #tpu.memory_space<vmem>>, vector<1x128xf32>
    %26 = vector.broadcast %25 : vector<1x128xf32> to vector<8x128xf32>
    %27 = arith.addf %24, %26 : vector<8x128xf32>
    %c0_10 = arith.constant 0 : index
    %c0_11 = arith.constant 0 : index
    %28 = vector.load %arg4[%c0_10, %c0_11] : memref<128x128xf32, #tpu.memory_space<vmem>>, vector<128x128xf32>
    %cst_12 = arith.constant dense<0.000000e+00> : vector<8x128xf32>
    %29 = tpu.matmul %27, %28, %cst_12 {dimension_numbers = #tpu.dot_dimension_numbers<[1], [0], [0], [1], [0, 0, 1, 1], [], []>} : vector<8x128xf32>, vector<128x128xf32>, vector<8x128xf32> -> vector<8x128xf32>
    %c0_13 = arith.constant 0 : index
    %c0_14 = arith.constant 0 : index
    %30 = vector.load %arg5[%c0_13, %c0_14] : memref<1x128xf32, #tpu.memory_space<vmem>>, vector<1x128xf32>
    %31 = vector.broadcast %30 : vector<1x128xf32> to vector<8x128xf32>
    %32 = arith.addf %29, %31 : vector<8x128xf32>
    %cst_15 = arith.constant 5.000000e-01 : f32
    %33 = vector.broadcast %cst_15 : f32 to vector<8x128xf32>
    %34 = arith.mulf %33, %32 : vector<8x128xf32>
    %cst_16 = arith.constant 0.707106769 : f32
    %35 = vector.broadcast %cst_16 : f32 to vector<8x128xf32>
    %36 = arith.mulf %32, %35 : vector<8x128xf32>
    %37 = math.erf %36 : vector<8x128xf32>
    %cst_17 = arith.constant 1.000000e+00 : f32
    %38 = vector.broadcast %cst_17 : f32 to vector<8x128xf32>
    %39 = arith.addf %38, %37 : vector<8x128xf32>
    %40 = arith.mulf %34, %39 : vector<8x128xf32>
    %c0_18 = arith.constant 0 : index
    %c0_19 = arith.constant 0 : index
    %41 = vector.load %arg6[%c0_18, %c0_19] : memref<128x128xf32, #tpu.memory_space<vmem>>, vector<128x128xf32>
    %cst_20 = arith.constant dense<0.000000e+00> : vector<8x128xf32>
    %42 = tpu.matmul %40, %41, %cst_20 {dimension_numbers = #tpu.dot_dimension_numbers<[1], [0], [0], [1], [0, 0, 1, 1], [], []>} : vector<8x128xf32>, vector<128x128xf32>, vector<8x128xf32> -> vector<8x128xf32>
    %c0_21 = arith.constant 0 : index
    %c0_22 = arith.constant 0 : index
    %43 = vector.load %arg7[%c0_21, %c0_22] : memref<1x128xf32, #tpu.memory_space<vmem>>, vector<1x128xf32>
    %44 = vector.broadcast %43 : vector<1x128xf32> to vector<8x128xf32>
    %45 = arith.addf %42, %44 : vector<8x128xf32>
    %c0_23 = arith.constant 0 : index
    %c0_24 = arith.constant 0 : index
    %46 = vector.load %arg8[%c0_23, %c0_24] : memref<8x128xf32, #tpu.memory_space<vmem>>, vector<8x128xf32>
    tpu.vector_store %arg8[%c0_23, %c0_24], %45 {strides = array<i32>} : memref<8x128xf32, #tpu.memory_space<vmem>>, vector<8x128xf32>,
    return
  }
  func.func @transform_0(%arg0: i32) -> (i32, i32) {
    %c0_i32 = arith.constant 0 : i32
    %c0_i32_0 = arith.constant 0 : i32
    return %arg0, %c0_i32 : i32, i32
  }
  func.func @transform_1(%arg0: i32) -> (i32, i32) {
    %c0_i32 = arith.constant 0 : i32
    %c0_i32_0 = arith.constant 0 : i32
    %c0_i32_1 = arith.constant 0 : i32
    return %c0_i32, %c0_i32_0 : i32, i32
  }
  func.func @transform_2(%arg0: i32) -> (i32, i32) {
    %c0_i32 = arith.constant 0 : i32
    %c0_i32_0 = arith.constant 0 : i32
    %c0_i32_1 = arith.constant 0 : i32
    return %c0_i32, %c0_i32_0 : i32, i32
  }
  func.func @transform_3(%arg0: i32) -> (i32, i32) {
    %c0_i32 = arith.constant 0 : i32
    %c0_i32_0 = arith.constant 0 : i32
    %c0_i32_1 = arith.constant 0 : i32
    return %c0_i32, %c0_i32_0 : i32, i32
  }
  func.func @transform_4(%arg0: i32) -> (i32, i32) {
    %c0_i32 = arith.constant 0 : i32
    %c0_i32_0 = arith.constant 0 : i32
    %c0_i32_1 = arith.constant 0 : i32
    return %c0_i32, %c0_i32_0 : i32, i32
  }
  func.func @transform_5(%arg0: i32) -> (i32, i32) {
    %c0_i32 = arith.constant 0 : i32
    %c0_i32_0 = arith.constant 0 : i32
    %c0_i32_1 = arith.constant 0 : i32
    return %c0_i32, %c0_i32_0 : i32, i32
  }
  func.func @transform_6(%arg0: i32) -> (i32, i32) {
    %c0_i32 = arith.constant 0 : i32
    %c0_i32_0 = arith.constant 0 : i32
    %c0_i32_1 = arith.constant 0 : i32
    return %c0_i32, %c0_i32_0 : i32, i32
  }
  func.func @transform_7(%arg0: i32) -> (i32, i32) {
    %c0_i32 = arith.constant 0 : i32
    %c0_i32_0 = arith.constant 0 : i32
    return %arg0, %c0_i32 : i32, i32
  }
}

</mosaic_0001>

<bundles_post_ra>
// kernel: tpu_custom_call.1
= control target key start
LH: loop header
LB: loop body
LE: loop exit
PB: predicated region body
PF: predicated region fallthrough
CT: control target
= control target key end

     0   :  { %12 = vsyncpa [#allocation3], 0  ;;  %s1366_s0 = inlined_call_operand.hbm [shape: f32[16,128], index: 0, kind: input, shape index: {}]   ;;  %s1367_s1 = inlined_call_operand.vmem [shape: f32[1,128], index: 1, kind: input, shape index: {}]   ;;  %s1368_s2 = inlined_call_operand.vmem [shape: f32[1,128], index: 2, kind: input, shape index: {}]   ;;  %s1369_s3 = inlined_call_operand.hbm [shape: f32[128,128], index: 3, kind: input, shape index: {}]   ;;  %s1370_s4 = inlined_call_operand.vmem [shape: f32[1,128], index: 4, kind: input, shape index: {}]   ;;  %s1371_s5 = inlined_call_operand.hbm [shape: f32[128,128], index: 5, kind: input, shape index: {}]   ;;  %s1372_s6 = inlined_call_operand.vmem [shape: f32[1,128], index: 6, kind: input, shape index: {}]   ;;  %s1373_s7 = inlined_call_operand.hbm [shape: f32[16,128], index: 7, kind: output, shape index: {}]  }
   0x1   :  { %14 = vsyncpa [#allocation3 + $0x1], 0 }
   0x2   :  { %15 = vsyncpa [#allocation6], 0 }
   0x3   :  { %16 = vsyncpa [#allocation4], 0 }
   0x4   :  { %18 = vsyncpa [#allocation4 + $0x1], 0  ;;  %s1105_s24 = smov 0   ;;  %s1107_s25 = smov 0  }
   0x5   :  { %s1109_s26 = smov 0   ;;  %s1111_s27 = smov 0  }
   0x6 LB: > { %s1126_s28 = sadd.s32 4294967295, %s1054_s27   ;;  %s650_s29 = sadd.s32 4294967294, %s1054_s27   ;;  %s1054_s27 = sphi %s1111_s27, %s1393_s27   ;;  %s1050_s26 = sphi %s1109_s26, %s1392_s26   ;;  %s1046_s25 = sphi %s1107_s25, %s1391_s25   ;;  %s1042_s24 = sphi %s1105_s24, %s1390_s24  }
   0x7   : > { %p44_p0 = scmp.ne.s32.totalorder %s1046_s25, %s1042_s24  ;;  %p1374_p1 = scmp.eq.s32.totalorder %s1126_s28, 0 }
   0x8   : > { %p200_p3 = scmp.eq.s32.totalorder %s650_s29, 1  ;;  %p651_p5 = scmp.ge.s32.totalorder %s1054_s27, 1 }
   0x9   : > { %p1135_p4 = por %p1374_p1, %p44_p0  ;;  %p207_p7 = scmp.lt.s32.totalorder %s1054_s27, 3 }
   0xa   : > { %p1140_p6 = por %p200_p3, %p44_p0  ;;  %s1056_s10 = smov [#allocation5]  }
   0xb   : > { %s1377_s30 = scalar_select %p1135_p4, 1, 0 }
   0xc   : > { %s1378_s8 = scalar_select %p1140_p6, 1, 0 }
   0xd   : > { %p1145_p8 = pnand %p651_p5, %p207_p7  ;;  %s225_s11 = sshll.u32 %s1056_s10, 4  ;;  %s1149_s11 = int_to_ptr.vmem [resolvable:$true] %s225_s11 }
   0xe   : > { %s1057_s13 = smov [#allocation7]   ;;  %s898_s17 = scalar_lea.hbm %s1369_s3, 2048 }
   0xf   : > { %p834_p9 = pneg %p1145_p8  ;;  %s241_s14 = sshll.u32 %s1057_s13, 4  ;;  %s1160_s14 = int_to_ptr.vmem [resolvable:$true] %s241_s14 }
  0x10   : > { %p899_p12 = scmp.ne.s32.totalorder %s1369_s3, %s898_s17  ;;  %p905_p5 = scmp.lt.u32.totalorder %s898_s17, %s1369_s3 }
  0x11   : > { %p1156_p11 = pnand %p834_p9, %p1374_p1 }
  0x13   : > { %p900_p13 = pneg %p1156_p11 }
  0x15   : > { %p901_p0 = pnand %p900_p13, %p899_p12 }
  0x17   : > { %p902_p3 = pneg %p901_p0 }
  0x19   : > { %p907_p7 = pnand %p905_p5, %p902_p3 }
  0x1b   : > { %910 = shalt.err (!%p907_p7)
}
  0x1c   : > { %s911_s22 = scalar_lea.vmem %s1149_s11, 2048  ;;  %p919_p2 = scmp.lt.s32.totalorder %s1149_s11, %s1149_s11 }
  0x1d   : > { %p912_p9 = scmp.ne.s32.totalorder %s1149_s11, %s911_s22  ;;  %p920_p12 = scmp.lt.s32.totalorder %s911_s22, %s911_s22 }
  0x1f   : > { %p914_p10 = pnand %p912_p9, %p900_p13  ;;  %p921_p0 = por %p920_p12, %p919_p2 }
  0x21   : > { %p915_p1 = pneg %p914_p10 }
  0x23   : > { %p922_p6 = pnand %p921_p0, %p915_p1 }
  0x25   : > { %925 = shalt.err (!%p922_p6)
}
  0x26   : > { %s1058_s23 = smov 128   ;;  %s1059_s29 = smov 8  }
  0x27   : > { %837 = dma.hbm_to_vmem [thread:$0]  (!%p1156_p11), %s1369_s3, 2048, %s1149_s11, [#allocation6], %s1058_s23, %s1058_s23, %s1059_s29  }
  0x28   : > { %s926_s17 = scalar_lea.hbm %s1371_s5, 2048 }
  0x29   : > { %p927_p2 = scmp.ne.s32.totalorder %s1371_s5, %s926_s17  ;;  %p933_p10 = scmp.lt.u32.totalorder %s926_s17, %s1371_s5 }
  0x2b   : > { %p929_p1 = pnand %p927_p2, %p900_p13 }
  0x2d   : > { %p930_p6 = pneg %p929_p1 }
  0x2f   : > { %p935_p3 = pnand %p933_p10, %p930_p6 }
  0x31   : > { %938 = shalt.err (!%p935_p3)
}
  0x32   : > { %s939_s11 = scalar_lea.vmem %s1160_s14, 2048  ;;  %p947_p12 = scmp.lt.s32.totalorder %s1160_s14, %s1160_s14 }
  0x33   : > { %p940_p5 = scmp.ne.s32.totalorder %s1160_s14, %s939_s11  ;;  %p948_p0 = scmp.lt.s32.totalorder %s939_s11, %s939_s11 }
  0x35   : > { %p942_p7 = pnand %p940_p5, %p900_p13  ;;  %p949_p2 = por %p948_p0, %p947_p12 }
  0x37   : > { %p943_p9 = pneg %p942_p7 }
  0x39   : > { %p950_p1 = pnand %p949_p2, %p943_p9 }
  0x3b   : > { %953 = shalt.err (!%p950_p1)
}
  0x3c   : > { %840 = dma.hbm_to_vmem [thread:$0]  (!%p1156_p11), %s1371_s5, 2048, %s1160_s14, [#allocation6], %s1058_s23, %s1058_s23, %s1059_s29  }
  0x3d   : > { %s1215_s13 = sadd.s32 1, %s1054_s27   ;;  %s31_s12 = sadd.s32 1, %s1050_s26 }
  0x3e   : > { %s28_s15 = ssub.s32 %s1054_s27, %s1215_s13  ;;  %p38_p13 = scmp.ne.s32.totalorder %s1050_s26, %s1046_s25 }
  0x3f   : > { %p29_p6 = scmp.eq.s32.totalorder %s28_s15, 0  ;;  %p39_p10 = scmp.eq.s32.totalorder %s1054_s27, 0 }
  0x40   : > { %p1381_p3 = scmp.eq.s32.totalorder %s1126_s28, 1  ;;  %p851_p7 = scmp.lt.s32.totalorder %s1054_s27, 2 }
  0x41   : > { %s1231_s17 = scalar_select %p29_p6, %s1050_s26, %s31_s12  }
  0x42   : > { %p1225_p5 = por %p1381_p3, %p38_p13  ;;  %p40_p9 = por %p39_p10, %p38_p13 }
  0x43   : > { %s258_s18 = sand.u32 1, %s1050_s26   ;;  %s656_s14 = sshll.u32 %s1054_s27, 7 }
  0x44   : > { %s1382_s16 = scalar_select %p1225_p5, 1, 0 }
  0x45   : > { %s655_s19 = sshll.u32 %s258_s18, 3  ;;  %s1238_s20 = scalar_lea.hbm %s1366_s0, %s656_s14 }
  0x46   : > { %s262_s21 = scalar_lea.vmem [#allocation2], %s655_s19  ;;  %p1242_p11 = pnand %p851_p7, %p40_p9 }
  0x47   : > { %s269_s11 = sshll.u32 %s262_s21, 4  ;;  %s259_s10 = scalar_lea.sflag [#allocation3], %s258_s18  ;;  %s1240_s11 = int_to_ptr.vmem [resolvable:$true] %s269_s11 }
  0x48   : > { %s954_s12 = scalar_lea.hbm %s1238_s20, 128  ;;  %p956_p0 = pneg %p1242_p11 }
  0x49   : > { %p955_p12 = scmp.ne.s32.totalorder %s1238_s20, %s954_s12  ;;  %s959_s14 = scalar_lea.hbm %s1366_s0, 256 }
  0x4a   : > { %p960_p13 = scmp.lt.u32.totalorder %s1238_s20, %s1366_s0  ;;  %p961_p6 = scmp.lt.u32.totalorder %s959_s14, %s954_s12 }
  0x4b   : > { %p957_p2 = pnand %p956_p0, %p955_p12  ;;  %p963_p3 = scmp.lt.u32.totalorder %s954_s12, %s1238_s20 }
  0x4c   : > { %p962_p10 = por %p961_p6, %p960_p13 }
  0x4d   : > { %p958_p1 = pneg %p957_p2 }
  0x4e   : > { %p964_p7 = por %p963_p3, %p962_p10 }
  0x50   : > { %p965_p9 = pnand %p964_p7, %p958_p1 }
  0x52   : > { %968 = shalt.err (!%p965_p9)
}
  0x53   : > { %s969_s18 = scalar_lea.vmem %s1240_s11, 128  ;;  %s1060_s21 = smov [#allocation2]  }
  0x54   : > { %p970_p12 = scmp.ne.s32.totalorder %s1240_s11, %s969_s18  ;;  %s974_s15 = sshll.u32 %s1060_s21, 4  ;;  %s975_s15 = int_to_ptr.vmem [resolvable:$false] %s974_s15 }
  0x55   : > { %s976_s19 = scalar_lea.vmem %s975_s15, 256  ;;  %p977_p4 = scmp.lt.s32.totalorder %s1240_s11, %s975_s15 }
  0x56   : > { %p972_p2 = pnand %p970_p12, %p956_p0  ;;  %p978_p13 = scmp.lt.s32.totalorder %s976_s19, %s969_s18 }
  0x58   : > { %p973_p5 = pneg %p972_p2  ;;  %p979_p6 = por %p978_p13, %p977_p4 }
  0x5a   : > { %p980_p10 = pnand %p979_p6, %p973_p5 }
  0x5c   : > { %983 = shalt.err (!%p980_p10)
}
  0x5d   : > { %844 = dma.hbm_to_vmem [thread:$0]  (!%p1242_p11), %s1238_s20, 128, %s1240_s11, %s259_s10  }
  0x5e   : > { %278 = sbr.rel (%p1145_p8) target bundleno = 877 (0x36d), region = 48  ;;  %s1274_s12 = sand.u32 (!%p1145_p8), 1, %s1046_s25  }
  0x5f   : > { %s658_s14 = sshll.u32 (!%p1145_p8), %s1274_s12, 3  ;;  %s281_s23 = scalar_lea.sflag (!%p1145_p8), [#allocation3], %s1274_s12 }
  0x60   : > { %s284_s29 = scalar_lea.vmem (!%p1145_p8), [#allocation2], %s658_s14  ;;  %p1384_p4 = scmp.ne.s32.totalorder (!%p1145_p8), %s1377_s30, 0 }
  0x65   : > { %1029 = dma.done.wait (%p1384_p4), %s281_s23, 128  }
  0x66   : > { %1031 = vsyncadd (%p1384_p4), %s281_s23, 4294967168  ;;  %p1385_p5 = scmp.eq.s32.totalorder %s1126_s28, 0 }
  0x68   : > { %1033 = dma.done.wait (%p1385_p5), [#allocation6], 4096   ;;  %p1386_p8 = pmov %p1385_p5 }
  0x69   : > { %v323_v0 = vld [vmem:[%s284_s29] sm:$0xff]  ;;  %v355_v1 = vld [vmem:[#allocation5] sm:$0xff]  ;;  %v356_v2 = vld [vmem:[#allocation5 + $0x8] sm:$0xff]  ;;  %v1061_v4 = vmov 0.0|0.0   ;;  %v328_v11 = vlaneseq  ;;  %vm1062_vm1 = vmmov 0   ;;  %v1063_v26 = vmov 0.0  }
  0x6a   : > { %1035 = vsyncadd (%p1386_p8), [#allocation6], 4294963200  ;;  %324 = vadd.xlane.f32.xlu0 %v323_v0  ;;  %v357_v3 = vld [vmem:[#allocation5 + $0x10] sm:$0xff]  ;;  %774 = vmatprep.subr.bf16.mxu0 %v1061_v4  ;;  %v775_v5 = vpack.c.bf16 %v356_v2, %v355_v1  ;;  %v358_v6 = vld [vmem:[#allocation5 + $0x18] sm:$0xff]  ;;  %s667_s15 = sshll.u32 %s1126_s28, 7  ;;  %s322_s19 = scalar_lea.vmem [#allocation8], %s658_s14 }
  0x6b   : > { %798 = vmatprep.subr.bf16.mxu1 %v1061_v4  ;;  %v778_v7 = vpack.c.bf16 %v358_v6, %v357_v3  ;;  %v359_v8 = vld [vmem:[#allocation5 + $0x20] sm:$0xff]  ;;  %v360_v9 = vld [vmem:[#allocation5 + $0x28] sm:$0xff]  ;;  %v329_v12 = vand.u32 127, %v328_v11  ;;  %v361_v18 = vld [vmem:[#allocation5 + $0x30] sm:$0xff]  ;;  %736 = vmatprep.mubr.msk.f32.mxu0 %vm1062_vm1, %v1063_v26  ;;  %s561_s23 = sshll.u32 %s322_s19, 4  ;;  %s1322_s9 = scalar_lea.hbm %s1373_s7, %s667_s15  ;;  %s1324_s23 = int_to_ptr.vmem [resolvable:$true] %s561_s23 }
  0x6c   : > { %776 = vmatpush3.bf16.msra.mxu0 %v775_v5  ;;  %v781_v10 = vpack.c.bf16 %v360_v9, %v359_v8  ;;  %v362_v19 = vld [vmem:[#allocation5 + $0x38] sm:$0xff]  ;;  %v363_v21 = vld [vmem:[#allocation5 + $0x40] sm:$0xff]  ;;  %v364_v22 = vld [vmem:[#allocation5 + $0x48] sm:$0xff]  ;;  %771 = vmatprep.mubr.msk.f32.mxu1 %vm1062_vm1, %v1063_v26  ;;  %s548_s20 = scalar_lea.sflag [#allocation4], %s1274_s12  ;;  %s984_s11 = scalar_lea.vmem %s1324_s23, 128 }
  0x6d   : > { %777 = vmatprep.subr.bf16.mxu0 %v1061_v4  ;;  %vm330_vm0 = vcmp.lt.s32.totalorder %v329_v12, 32  ;;  %v784_v20 = vpack.c.bf16 %v362_v19, %v361_v18  ;;  %v787_v23 = vpack.c.bf16 %v364_v22, %v363_v21  ;;  %v365_v24 = vld [vmem:[#allocation5 + $0x50] sm:$0xff]  ;;  %v366_v25 = vld [vmem:[#allocation5 + $0x58] sm:$0xff]  ;;  %v367_v28 = vld [vmem:[#allocation5 + $0x60] sm:$0xff]  ;;  %p985_p11 = scmp.ne.s32.totalorder %s1324_s23, %s984_s11  ;;  %p1387_p0 = scmp.ne.s32.totalorder %s1382_s16, 0 }
  0x6e   : > { %v790_v27 = vpack.c.bf16 %v366_v25, %v365_v24  ;;  %v368_v29 = vld [vmem:[#allocation5 + $0x68] sm:$0xff]  ;;  %v369_v31 = vld [vmem:[#allocation5 + $0x70] sm:$0xff]  ;;  %v370_v32 = vld [vmem:[#allocation5 + $0x78] sm:$0xff]  ;;  %s1064_s28 = smov [#allocation8]  }
  0x6f   : > { %v793_v30 = vpack.c.bf16 %v368_v29, %v367_v28  ;;  %v796_v33 = vpack.c.bf16 %v370_v32, %v369_v31  ;;  %v453_v34 = vld [vmem:[#allocation7] sm:$0xff]  ;;  %v454_v35 = vld [vmem:[#allocation7 + $0x8] sm:$0xff]  ;;  %v455_v36 = vld [vmem:[#allocation7 + $0x10] sm:$0xff]  ;;  %p986_p1 = pnand %p985_p11, %p1387_p0  ;;  %s988_s14 = sshll.u32 %s1064_s28, 4  ;;  %s989_s14 = int_to_ptr.vmem [resolvable:$false] %s988_s14 }
  0x70   : > { %779 = vmatpush3.bf16.msra.mxu0 %v778_v7  ;;  %v799_v37 = vpack.c.bf16 %v454_v35, %v453_v34  ;;  %v456_v38 = vld [vmem:[#allocation7 + $0x18] sm:$0xff]  ;;  %v457_v40 = vld [vmem:[#allocation7 + $0x20] sm:$0xff]  ;;  %v458_v41 = vld [vmem:[#allocation7 + $0x28] sm:$0xff]  ;;  %s990_s22 = scalar_lea.vmem %s989_s14, 256  ;;  %p991_p7 = scmp.lt.s32.totalorder %s1324_s23, %s989_s14 }
  0x71   : > { %780 = vmatprep.subr.bf16.mxu0 %v1061_v4  ;;  %v802_v39 = vpack.c.bf16 %v456_v38, %v455_v36  ;;  %v805_v42 = vpack.c.bf16 %v458_v41, %v457_v40  ;;  %v662_v47 = vld [vmem:[%s1367_s1] ss:$0 sm:$0xff]  ;;  %v460_v53 = vld [vmem:[#allocation7 + $0x38] sm:$0xff]  ;;  %v461_v55 = vld [vmem:[#allocation7 + $0x40] sm:$0xff]  ;;  %p987_p3 = pneg %p986_p1  ;;  %p992_p9 = scmp.lt.s32.totalorder %s990_s22, %s984_s11 }
  0x72   : > { %800 = vmatpush3.bf16.msra.mxu1 %v799_v37  ;;  %v663_v49 = vld [vmem:[%s1368_s2] ss:$0 sm:$0xff]  ;;  %v462_v56 = vld [vmem:[#allocation7 + $0x48] sm:$0xff]  ;;  %v464_v59 = vld [vmem:[#allocation7 + $0x58] sm:$0xff] }
  0x73   : > { %801 = vmatprep.subr.bf16.mxu1 %v1061_v4  ;;  %v459_v52 = vld [vmem:[#allocation7 + $0x30] sm:$0xff]  ;;  %v811_v57 = vpack.c.bf16 %v462_v56, %v461_v55  ;;  %v465_v61 = vld [vmem:[#allocation7 + $0x60] sm:$0xff]  ;;  %v466_v62 = vld [vmem:[#allocation7 + $0x68] sm:$0xff]  ;;  %p993_p12 = por %p992_p9, %p991_p7 }
  0x74   : > { %782 = vmatpush3.bf16.msra.mxu0 %v781_v10  ;;  %v808_v54 = vpack.c.bf16 %v460_v53, %v459_v52  ;;  %v463_v58 = vld [vmem:[#allocation7 + $0x50] sm:$0xff]  ;;  %v817_v63 = vpack.c.bf16 %v466_v62, %v465_v61  ;;  %v468_v1 = vld [vmem:[#allocation7 + $0x78] sm:$0xff] }
  0x75   : > { %783 = vmatprep.subr.bf16.mxu0 %v1061_v4  ;;  %v814_v60 = vpack.c.bf16 %v464_v59, %v463_v58  ;;  %v664_v3 = vld [vmem:[%s1370_s4] ss:$0 sm:$0xff]  ;;  %p994_p2 = pnand %p993_p12, %p987_p3 }
  0x76   : > { %803 = vmatpush3.bf16.msra.mxu1 %v802_v39  ;;  %v665_v12 = vld [vmem:[%s1372_s6] ss:$0 sm:$0xff] }
  0x77   : > { %804 = vmatprep.subr.bf16.mxu1 %v1061_v4 }
  0x78   : > { %785 = vmatpush3.bf16.msra.mxu0 %v784_v20 }
  0x79   : > { %786 = vmatprep.subr.bf16.mxu0 %v1061_v4 }
  0x7a   : > { %806 = vmatpush3.bf16.msra.mxu1 %v805_v42 }
  0x7b   : > { %807 = vmatprep.subr.bf16.mxu1 %v1061_v4 }
  0x7c   : > { %788 = vmatpush3.bf16.msra.mxu0 %v787_v23 }
  0x7d   : > { %789 = vmatprep.subr.bf16.mxu0 %v1061_v4 }
  0x7e   : > { %809 = vmatpush3.bf16.msra.mxu1 %v808_v54 }
  0x7f   : > { %810 = vmatprep.subr.bf16.mxu1 %v1061_v4 }
  0x80   : > { %791 = vmatpush3.bf16.msra.mxu0 %v790_v27 }
  0x81   : > { %792 = vmatprep.subr.bf16.mxu0 %v1061_v4 }
  0x82   : > { %812 = vmatpush3.bf16.msra.mxu1 %v811_v57 }
  0x83   : > { %813 = vmatprep.subr.bf16.mxu1 %v1061_v4 }
  0x84   : > { %794 = vmatpush3.bf16.msra.mxu0 %v793_v30 }
  0x85   : > { %795 = vmatprep.subr.bf16.mxu0 %v1061_v4 }
  0x86   : > { %815 = vmatpush3.bf16.msra.mxu1 %v814_v60 }
  0x87   : > { %816 = vmatprep.subr.bf16.mxu1 %v1061_v4 }
  0x88   : > { %797 = vmatpush3.bf16.msra.mxu0 %v796_v33 }
  0x8a   : > { %818 = vmatpush3.bf16.msra.mxu1 %v817_v63 }
  0x8b   : > { %819 = vmatprep.subr.bf16.mxu1 %v1061_v4 }
  0xf7   : > { %v325_v13 = vpop.xlane.xlu0 %324 }
  0xf8   : > { %v326_v14 = vmul.f32 0.03125, %v325_v13 }
  0xfa   : > { %v327_v15 = vsub.f32 %v323_v0, %v326_v14  ;;  %v467_v0 = vld [vmem:[#allocation7 + $0x70] sm:$0xff] }
  0xfb   : > { %v820_v2 = vpack.c.bf16 %v468_v1, %v467_v0 }
  0xfc   : > { %v331_v16 = vsel %vm330_vm0, %v327_v15, 0.0 }
  0xfd   : > { %v332_v17 = vmul.f32 %v331_v16, %v331_v16  ;;  %821 = vmatpush3.bf16.msra.mxu1 %v820_v2 }
  0xff   : > { %333 = vadd.xlane.f32.xlu0 %v332_v17 }
 0x18c   : > { %v334_v43 = vpop.xlane.xlu0 %333 }
 0x18d   : > { %v335_v44 = vmul.f32 0.03125, %v334_v43 }
 0x18f   : > { %v336_v45 = vadd.f32 1e-05, %v335_v44 }
 0x191   : > { %894 = vrsqrt.f32 %v336_v45 }
 0x19b   : > { %v895_v46 = vpop.eup %894 }
 0x19c   : > { %v338_v48 = vmul.f32 %v895_v46, %v331_v16 }
 0x19e   : > { %v346_v50 = vmul.f32 %v662_v47, %v338_v48 }
 0x1a0   : > { %v354_v51 = vadd.f32 %v663_v49, %v346_v50 }
 0x1a2   : > { %737 = vmatmul.mubr.f32.vlgmr.msra.gmra.mrb[0].mxu0 %v354_v51 }
 0x275   : > { %v444_v5 = vpop.f32.mrb[0].mxu0 }
 0x276   : > { %v445_v6 = vadd.f32 %v664_v3, %v444_v5  ;;  %v738_v7 = vpop.f32.mrb[1].mxu0 }
 0x278   : > { %v449_v8 = vmul.f32 0.70710677, %v445_v6  ;;  %v448_v10 = vmul.f32 0.5, %v445_v6 }
 0x27a   : > { %896 = verf.f32 %v449_v8 }
 0x284   : > { %v897_v9 = vpop.eup %896 }
 0x285   : > { %v451_v11 = vadd.f32 1.0, %v897_v9 }
 0x287   : > { %v452_v4 = vmul.f32 %v451_v11, %v448_v10 }
 0x289   : > { %772 = vmatmul.mubr.f32.vlgmr.msra.gmra.mrb[0].mxu1 %v452_v4 }
 0x35c   : > { %v542_v13 = vpop.f32.mrb[0].mxu1 }
 0x35d   : > { %v543_v14 = vadd.f32 %v665_v12, %v542_v13  ;;  %v773_v15 = vpop.f32.mrb[1].mxu1 }
 0x35f   : > { %546 = vst [vmem:[%s322_s19] sm:$0xff] %v543_v14 }
 0x360   : > { %997 = shalt.err (!%p994_p2)
}
 0x361   : > { %s998_s12 = scalar_lea.hbm %s1322_s9, 128  ;;  %s1002_s21 = scalar_lea.hbm %s1373_s7, 256 }
 0x362   : > { %p999_p13 = scmp.ne.s32.totalorder %s1322_s9, %s998_s12  ;;  %p1003_p4 = scmp.lt.u32.totalorder %s1322_s9, %s1373_s7 }
 0x363   : > { %p1004_p5 = scmp.lt.u32.totalorder %s1002_s21, %s998_s12  ;;  %p1006_p11 = scmp.lt.u32.totalorder %s998_s12, %s1322_s9 }
 0x364   : > { %p1000_p6 = pnand %p999_p13, %p1387_p0 }
 0x365   : > { %p1005_p8 = por %p1004_p5, %p1003_p4 }
 0x366   : > { %p1001_p10 = pneg %p1000_p6 }
 0x367   : > { %p1007_p1 = por %p1006_p11, %p1005_p8 }
 0x369   : > { %p1008_p3 = pnand %p1007_p1, %p1001_p10 }
 0x36b   : > { %1011 = shalt.err (!%p1008_p3)
}
 0x36c   : > { %832 = dma.vmem_to_hbm [thread:$0]  (%p1387_p0), %s1324_s23, 128, %s1322_s9, %s548_s20  }
 0x36d PF: > { %s573_s29 = sand.u32 1, %s1042_s24   ;;  %p1388_p7 = scmp.ne.s32.totalorder %s1378_s8, 0 }
 0x36e   : > { %p1389_p9 = scmp.ge.s32.totalorder %s1054_s27, 2  ;;  %s574_s30 = scalar_lea.sflag [#allocation4], %s573_s29 }
 0x370   : > { %p846_p12 = pnand %p1389_p9, %p1388_p7 }
 0x372   : > { %1037 = dma.done.wait (!%p846_p12), %s574_s30, 128  }
 0x373   : > { %1039 = vsyncadd (!%p846_p12), %s574_s30, 4294967168  ;;  %p21_p2 = scmp.ge.s32.totalorder %s1215_s13, 4   ;;  %s1390_s24 = smov %s1046_s25 }
 0x374   : > { %s1391_s25 = smov %s1050_s26  ;;  %s1392_s26 = smov %s1231_s17 }
 0x375   : > { %s1393_s27 = smov %s1215_s13  ;;  %23 = sbr.rel (!%p21_p2) target bundleno = 6 (0x6), region = 101 }
 0x37c   :  { %579 = vsyncpa [#allocation3], 1 }
 0x37d   :  { %581 = vsyncpa [#allocation3 + $0x1], 1 }
 0x37e   :  { %582 = vsyncpa [#allocation6], 1 }
 0x37f   :  { %583 = vsyncpa [#allocation4], 1 }
 0x380   :  { %585 = vsyncpa [#allocation4 + $0x1], 1 }

</bundles_post_ra>
